<compile_context>
chip_gen: v6e
topology: v6e:2x2x1
jax: 0.10.0
libtpu: 0.0.40
codegen_flags: <defaults>
</compile_context>

<pallas_src>
import jax
import jax.numpy as jnp
from jax.experimental import pallas as pl
from jax.experimental.pallas import tpu as pltpu

_LANES = 512          # lane width of the flattened slab (multiple of 128)
_BLOCK_ROWS = 1024    # 1024 x 512 x 4 B = 2 MiB per input block


def _cdiv(a, b):
    return -(-a // b)


def _ssd_kernel(o1_ref, o2_ref, out_ref, acc_ref):
    """Sum-of-squared-differences over one contiguous stripe of the flattened inputs.

    Grid: (num_partials [parallel], num_k [arbitrary]).
    out_ref: (1, _LANES) lane-wise partial sums for this stripe (reduced outside).
    acc_ref: block-shaped f32 VMEM accumulator -> per-step work is elementwise VPU only.
    """
    k = pl.program_id(1)

    @pl.when(k == 0)
    def _():
        acc_ref[...] = jnp.zeros_like(acc_ref)

    diff = o1_ref[...].astype(jnp.float32) - o2_ref[...].astype(jnp.float32)
    acc_ref[...] += diff * diff

    @pl.when(k == pl.num_programs(1) - 1)
    def _():
        # Single sublane-direction (XLU) reduce in the epilogue; output stays lane-dense.
        out_ref[...] = jnp.sum(acc_ref[...], axis=0, keepdims=True)


def _sum_squared_diff(output1, output2):
    """Pallas streaming reduction of sum((output1 - output2)**2) over all elements."""
    n = output1.size
    o1 = output1.reshape(-1)
    o2 = output2.reshape(-1)

    rows = _cdiv(n, _LANES)
    if rows <= _BLOCK_ROWS:
        # Tiny input: one block covering the whole (padded) slab; block == full array shape.
        num_partials, num_k, block_rows = 1, 1, rows
        rows_padded = rows
    else:
        num_partials = 2                      # both TensorCores on v7x
        block_rows = _BLOCK_ROWS
        blocks = _cdiv(rows, block_rows)
        blocks = _cdiv(blocks, num_partials) * num_partials
        rows_padded = blocks * block_rows
        num_k = blocks // num_partials

    pad = rows_padded * _LANES - n
    if pad:
        o1 = jnp.pad(o1, (0, pad))            # zero padding contributes 0 to the SSD
        o2 = jnp.pad(o2, (0, pad))
    o1 = o1.reshape(rows_padded, _LANES)
    o2 = o2.reshape(rows_padded, _LANES)

    in_map = lambda c, k: (c * num_k + k, 0)  # contiguous stripe per parallel index

    partials = pl.pallas_call(
        _ssd_kernel,
        out_shape=jax.ShapeDtypeStruct((num_partials, _LANES), jnp.float32),
        grid_spec=pltpu.PrefetchScalarGridSpec(
            num_scalar_prefetch=0,
            grid=(num_partials, num_k),
            in_specs=[
                pl.BlockSpec((block_rows, _LANES), in_map),   # output1 stripe block
                pl.BlockSpec((block_rows, _LANES), in_map),   # output2 stripe block
            ],
            out_specs=pl.BlockSpec((1, _LANES), lambda c, k: (c, 0)),
            scratch_shapes=[pltpu.VMEM((block_rows, _LANES), jnp.float32)],
        ),
        compiler_params=pltpu.CompilerParams(
            dimension_semantics=("parallel", "arbitrary"),
            vmem_limit_bytes=32 * 1024 * 1024,
        ),
    )(o1, o2)
    return jnp.sum(partials)


def contrastive_loss(output1, output2, label, *, margin=1.0):
    """output1, output2: same-shape float arrays; label: 0/1 floats. Returns scalar f32."""
    ssd = _sum_squared_diff(output1, output2)
    d = jnp.sqrt(ssd)                                    # global euclidean distance
    clamped = jnp.maximum(jnp.float32(margin) - d, 0.0)  # clamp(margin - d, min=0)
    lbar = jnp.mean(label.astype(jnp.float32))           # hoisted out of the kernel
    # mean over label of: label*d^2 + (1-label)*clamp(margin-d, 0)^2
    return lbar * (d * d) + (1.0 - lbar) * (clamped * clamped)


def _reference(output1, output2, label, margin=1.0):
    d = jnp.sqrt(jnp.sum((output1 - output2) ** 2))
    loss = label * d**2 + (1.0 - label) * jnp.clip(margin - d, 0.0) ** 2
    return jnp.mean(loss)


if __name__ == "__main__":
    key = jax.random.PRNGKey(0)
    k1, k2, k3 = jax.random.split(key, 3)

    # Small siamese-embedding-like shapes (single-block path).
    B, D = 8, 256
    output1 = jax.random.normal(k1, (B, D), dtype=jnp.float32) * 0.1
    output2 = jax.random.normal(k2, (B, D), dtype=jnp.float32) * 0.1
    label = jax.random.bernoulli(k3, 0.5, (B,)).astype(jnp.float32)

    loss = jax.block_until_ready(contrastive_loss(output1, output2, label, margin=1.0))
    ref = jax.block_until_ready(_reference(output1, output2, label, margin=1.0))
    assert jnp.allclose(loss, ref, rtol=1e-5, atol=1e-5), (loss, ref)

    # Moderate size exercising the tiled / two-stripe pipelined path.
    B2, D2 = 96, 12345  # deliberately not a multiple of the slab width (tests padding)
    ka, kb, kc = jax.random.split(jax.random.PRNGKey(1), 3)
    a = jax.random.normal(ka, (B2, D2), dtype=jnp.float32) * 0.01
    b = jax.random.normal(kb, (B2, D2), dtype=jnp.float32) * 0.01
    lbl = jax.random.bernoulli(kc, 0.5, (B2,)).astype(jnp.float32)

    loss2 = jax.block_until_ready(contrastive_loss(a, b, lbl, margin=1.0))
    ref2 = jax.block_until_ready(_reference(a, b, lbl, margin=1.0))
    assert jnp.allclose(loss2, ref2, rtol=1e-4, atol=1e-5), (loss2, ref2)

    print("KERNEL_OK")
</pallas_src>

<mosaic_0001>
module attributes {stable_mosaic.version = 11 : i64} {
  func.func @_ssd_kernel(%arg0: i32, %arg1: i32, %arg2: memref<4x512xf32, #tpu.memory_space<vmem>>, %arg3: memref<4x512xf32, #tpu.memory_space<vmem>>, %arg4: memref<1x512xf32, #tpu.memory_space<vmem>>, %arg5: memref<4x512xf32, #tpu.memory_space<vmem>>) attributes {dimension_semantics = [#tpu.dimension_semantics<parallel>, #tpu.dimension_semantics<arbitrary>], iteration_bounds = array<i64: 1, 1>, scalar_prefetch = 0 : i64, scratch_operands = 1 : i64, tpu.core_type = #tpu.core_type<tc>, window_params = [{transform_indices = @transform_0, window_bounds = array<i64: 4, 512>}, {transform_indices = @transform_1, window_bounds = array<i64: 4, 512>}, {transform_indices = @transform_2, window_bounds = array<i64: 1, 512>}]} {
    %c0_i32 = arith.constant 0 : i32
    %0 = arith.cmpi eq, %arg1, %c0_i32 : i32
    %1 = arith.extui %0 : i1 to i32
    %c0_i32_0 = arith.constant 0 : i32
    %2 = arith.cmpi ne, %1, %c0_i32_0 : i32
    scf.if %2 {
      %cst = arith.constant 0.000000e+00 : f32
      %13 = vector.broadcast %cst : f32 to vector<4x512xf32>
      %c0_10 = arith.constant 0 : index
      %c0_11 = arith.constant 0 : index
      %14 = vector.load %arg5[%c0_10, %c0_11] : memref<4x512xf32, #tpu.memory_space<vmem>>, vector<4x512xf32>
      tpu.vector_store %arg5[%c0_10, %c0_11], %13 {strides = array<i32>} : memref<4x512xf32, #tpu.memory_space<vmem>>, vector<4x512xf32>,
    } else {
    }
    %c0 = arith.constant 0 : index
    %c0_1 = arith.constant 0 : index
    %3 = vector.load %arg2[%c0, %c0_1] : memref<4x512xf32, #tpu.memory_space<vmem>>, vector<4x512xf32>
    %c0_2 = arith.constant 0 : index
    %c0_3 = arith.constant 0 : index
    %4 = vector.load %arg3[%c0_2, %c0_3] : memref<4x512xf32, #tpu.memory_space<vmem>>, vector<4x512xf32>
    %5 = arith.subf %3, %4 : vector<4x512xf32>
    %c0_4 = arith.constant 0 : index
    %c0_5 = arith.constant 0 : index
    %6 = vector.load %arg5[%c0_4, %c0_5] : memref<4x512xf32, #tpu.memory_space<vmem>>, vector<4x512xf32>
    %7 = arith.mulf %5, %5 : vector<4x512xf32>
    %8 = arith.addf %6, %7 : vector<4x512xf32>
    %c0_6 = arith.constant 0 : index
    %c0_7 = arith.constant 0 : index
    %9 = vector.load %arg5[%c0_6, %c0_7] : memref<4x512xf32, #tpu.memory_space<vmem>>, vector<4x512xf32>
    tpu.vector_store %arg5[%c0_6, %c0_7], %8 {strides = array<i32>} : memref<4x512xf32, #tpu.memory_space<vmem>>, vector<4x512xf32>,
    %c0_i32_8 = arith.constant 0 : i32
    %10 = arith.cmpi eq, %arg1, %c0_i32_8 : i32
    %11 = arith.extui %10 : i1 to i32
    %c0_i32_9 = arith.constant 0 : i32
    %12 = arith.cmpi ne, %11, %c0_i32_9 : i32
    scf.if %12 {
      %c0_10 = arith.constant 0 : index
      %c0_11 = arith.constant 0 : index
      %13 = vector.load %arg5[%c0_10, %c0_11] : memref<4x512xf32, #tpu.memory_space<vmem>>, vector<4x512xf32>
      %cst = arith.constant dense<0.000000e+00> : vector<512xf32>
      %14 = vector.multi_reduction <add>, %13, %cst [0] : vector<4x512xf32> to vector<512xf32>
      %15 = vector.shape_cast %14 : vector<512xf32> to vector<1x512xf32>
      %c0_12 = arith.constant 0 : index
      %c0_13 = arith.constant 0 : index
      %16 = vector.load %arg4[%c0_12, %c0_13] : memref<1x512xf32, #tpu.memory_space<vmem>>, vector<1x512xf32>
      tpu.vector_store %arg4[%c0_12, %c0_13], %15 {strides = array<i32>} : memref<1x512xf32, #tpu.memory_space<vmem>>, vector<1x512xf32>,
    } else {
    }
    return
  }
  func.func @transform_0(%arg0: i32, %arg1: i32) -> (i32, i32) {
    %c1_i32 = arith.constant 1 : i32
    %0 = arith.muli %arg0, %c1_i32 : i32
    %1 = arith.addi %0, %arg1 : i32
    %c0_i32 = arith.constant 0 : i32
    %c0_i32_0 = arith.constant 0 : i32
    return %1, %c0_i32 : i32, i32
  }
  func.func @transform_1(%arg0: i32, %arg1: i32) -> (i32, i32) {
    %c1_i32 = arith.constant 1 : i32
    %0 = arith.muli %arg0, %c1_i32 : i32
    %1 = arith.addi %0, %arg1 : i32
    %c0_i32 = arith.constant 0 : i32
    %c0_i32_0 = arith.constant 0 : i32
    return %1, %c0_i32 : i32, i32
  }
  func.func @transform_2(%arg0: i32, %arg1: i32) -> (i32, i32) {
    %c0_i32 = arith.constant 0 : i32
    %c0_i32_0 = arith.constant 0 : i32
    return %arg0, %c0_i32 : i32, i32
  }
}

</mosaic_0001>

<bundles_post_ra>
// kernel: tpu_custom_call.1
= control target key start
LH: loop header
LB: loop body
LE: loop exit
PB: predicated region body
PF: predicated region fallthrough
CT: control target
= control target key end

     0   :  { %7 = vsyncpa [#allocation4], 0  ;;  %s254_s0 = inlined_call_operand.hbm [shape: f32[4,512], index: 0, kind: input, shape index: {}]   ;;  %s255_s1 = inlined_call_operand.hbm [shape: f32[4,512], index: 1, kind: input, shape index: {}]   ;;  %s256_s2 = inlined_call_operand.hbm [shape: f32[1,512], index: 2, kind: output, shape index: {}]  }
   0x1   :  { %8 = vsyncpa [#allocation7], 0 }
   0x2   :  { %9 = vsyncpa [#allocation5], 0  ;;  %s226_s9 = smov [#allocation3]   ;;  %s227_s11 = smov [#allocation6]  }
   0x3   :  { %s20_s10 = sshll.u32 %s226_s9, 4  ;;  %s34_s12 = sshll.u32 %s227_s11, 4  ;;  %s21_s10 = int_to_ptr.vmem [resolvable:$true] %s20_s10  ;;  %s35_s12 = int_to_ptr.vmem [resolvable:$true] %s34_s12 }
   0x4   :  { %s168_s13 = scalar_lea.vmem %s21_s10, 256  ;;  %p173_p1 = scmp.lt.s32.totalorder %s21_s10, %s21_s10 }
   0x5   :  { %p169_p0 = scmp.ne.s32.totalorder %s21_s10, %s168_s13  ;;  %p174_p2 = scmp.lt.s32.totalorder %s168_s13, %s168_s13 }
   0x7   :  { %p175_p3 = por %p174_p2, %p173_p1 }
   0x9   :  { %p176_p4 = pnand %p175_p3, %p169_p0 }
   0xb   :  { %179 = shalt.err (!%p176_p4)
}
   0xc   :  { %23 = dma.hbm_to_vmem [thread:$0]  %s254_s0, 256, %s21_s10, [#allocation4]  }
   0xd   :  { %s188_s16 = scalar_lea.vmem %s35_s12, 256  ;;  %p193_p6 = scmp.lt.s32.totalorder %s35_s12, %s35_s12 }
   0xe   :  { %p189_p5 = scmp.ne.s32.totalorder %s35_s12, %s188_s16  ;;  %p194_p7 = scmp.lt.s32.totalorder %s188_s16, %s188_s16 }
  0x10   :  { %p195_p8 = por %p194_p7, %p193_p6 }
  0x12   :  { %p196_p9 = pnand %p195_p8, %p189_p5 }
  0x14   :  { %199 = shalt.err (!%p196_p9)
}
  0x15   :  { %37 = dma.hbm_to_vmem [thread:$0]  %s255_s1, 256, %s35_s12, [#allocation7]  }
  0x16   :  { %220 = dma.done.wait [#allocation4], 256  }
  0x17   :  { %221 = vsyncadd [#allocation4], 4294967040 }
  0x18   :  { %222 = dma.done.wait [#allocation7], 256  }
  0x19   :  { %223 = vsyncadd [#allocation7], 4294967040  ;;  %v52_v0 = vld [vmem:[#allocation3] sm:$0xff]  ;;  %v53_v1 = vld [vmem:[#allocation3 + $0x8] sm:$0xff]  ;;  %vm77_vm0 = vcmask 1043456   ;;  %v115_v24 = vlaneseq  ;;  %s229_s0 = smov [#allocation8]  }
  0x1a   :  { %v54_v2 = vld [vmem:[#allocation6] sm:$0xff]  ;;  %v55_v3 = vld [vmem:[#allocation6 + $0x8] sm:$0xff]  ;;  %v228_v22 = vmov 1966171168   ;;  %s146_s1 = sshll.u32 %s229_s0, 4  ;;  %s147_s1 = int_to_ptr.vmem [resolvable:$true] %s146_s1 }
  0x1b   :  { %v56_v4 = vsub.f32 %v52_v0, %v54_v2  ;;  %v57_v5 = vsub.f32 %v53_v1, %v55_v3  ;;  %v113_v23 = vunpack.c.l.s4 %v228_v22  ;;  %v116_v34 = vshrl.u32 %v115_v24, 7  ;;  %s200_s19 = scalar_lea.vmem %s147_s1, 64  ;;  %p205_p11 = scmp.lt.s32.totalorder %s147_s1, %s147_s1 }
  0x1c   :  { %vm137_vm1 = vcmp.lt.s32.totalorder %v115_v24, 512  ;;  %p201_p10 = scmp.ne.s32.totalorder %s147_s1, %s200_s19  ;;  %p206_p12 = scmp.lt.s32.totalorder %s200_s19, %s200_s19 }
  0x1d   :  { %v60_v6 = vmul.f32 %v56_v4, %v56_v4  ;;  %v61_v7 = vmul.f32 %v57_v5, %v57_v5  ;;  %v114_v33 = vunpack.c.0.s8 %v113_v23 }
  0x1e   :  { %p207_p13 = por %p206_p12, %p205_p11 }
  0x1f   :  { %v73_v8 = vcombine.high %v60_v6, %v60_v6  ;;  %v78_v9 = vsel %vm77_vm0, %v60_v6, 0.0  ;;  %v74_v10 = vcombine.high %v61_v7, %v61_v7  ;;  %v92_v12 = vsel %vm77_vm0, %v61_v7, 0.0 }
  0x20   :  { %v79_v11 = vrot.slane %v78_v9, 4  ;;  %v93_v14 = vrot.slane %v92_v12, 4  ;;  %v117_v42 = vsub.s32 %v114_v33, %v116_v34  ;;  %p208_p0 = pnand %p207_p13, %p201_p10 }
  0x21   :  { %v85_v13 = vsel %vm77_vm0, %v73_v8, 0.0  ;;  %v99_v17 = vsel %vm77_vm0, %v74_v10, 0.0 }
  0x22   :  { %v80_v15 = vadd.f32 %v79_v11, %v78_v9  ;;  %v86_v16 = vrot.slane %v85_v13, 4  ;;  %v94_v18 = vadd.f32 %v93_v14, %v92_v12  ;;  %v100_v19 = vrot.slane %v99_v17, 4 }
  0x24   :  { %v81_v20 = vrot.slane %v80_v15, 2  ;;  %v87_v21 = vadd.f32 %v86_v16, %v85_v13  ;;  %v95_v25 = vrot.slane %v94_v18, 2  ;;  %v101_v26 = vadd.f32 %v100_v19, %v99_v17 }
  0x26   :  { %v82_v27 = vadd.f32 %v81_v20, %v80_v15  ;;  %v88_v28 = vrot.slane %v87_v21, 2  ;;  %v96_v29 = vadd.f32 %v95_v25, %v94_v18  ;;  %v102_v30 = vrot.slane %v101_v26, 2 }
  0x28   :  { %v83_v31 = vrot.slane %v82_v27, 1  ;;  %v89_v32 = vadd.f32 %v88_v28, %v87_v21  ;;  %v97_v35 = vrot.slane %v96_v29, 1  ;;  %v103_v36 = vadd.f32 %v102_v30, %v101_v26 }
  0x2a   :  { %v84_v37 = vadd.f32 %v83_v31, %v82_v27  ;;  %v90_v38 = vrot.slane %v89_v32, 1  ;;  %v98_v39 = vadd.f32 %v97_v35, %v96_v29  ;;  %v104_v40 = vrot.slane %v103_v36, 1 }
  0x2c   :  { %v91_v41 = vadd.f32 %v90_v38, %v89_v32  ;;  %v105_v43 = vadd.f32 %v104_v40, %v103_v36 }
  0x2e   :  { %v110_v44 = vcombine.low %v84_v37, %v91_v41  ;;  %v111_v45 = vcombine.low %v98_v39, %v105_v43 }
  0x30   :  { %v118_v46 = vrot.slane %v110_v44, %v117_v42  ;;  %v125_v47 = vrot.slane %v111_v45, %v117_v42 }
  0x32   :  { %v126_v48 = vcombine.low %v118_v46, %v125_v47 }
  0x34   :  { %v133_v49 = vrot.slane %v126_v48, %v117_v42 }
  0x36   :  { %139 = vst.msk [vmem:[#allocation8] sm:$0xf] %vm137_vm1, %v133_v49 }
  0x37   :  { %211 = shalt.err (!%p208_p0)
}
  0x38   :  { %149 = dma.vmem_to_hbm [thread:$0]  %s147_s1, 64, %s256_s2, [#allocation5]  }
  0x39   :  { %224 = dma.done.wait [#allocation5], 64  }
  0x3a   :  { %225 = vsyncadd [#allocation5], 4294967232 }
  0x3b   :  { %153 = vsyncpa [#allocation4], 1 }
  0x3c   :  { %154 = vsyncpa [#allocation7], 1 }
  0x3d   :  { %155 = vsyncpa [#allocation5], 1 }

</bundles_post_ra>
